<compile_context>
chip_gen: v6e
topology: v6e:2x2x1
jax: 0.10.0
libtpu: 0.0.40
codegen_flags: <defaults>
</compile_context>

<pallas_src>
import jax
import jax.numpy as jnp
from jax.experimental import pallas as pl
from jax.experimental.pallas import tpu as pltpu

_LANE = 128
_SUBLANE = 8
_IN_FEATURES = 24
_OUT_FEATURES = 128


def _fused_affine_kernel(x_ref, wf_ref, bf_ref, o_ref):
    # Single matmul + bias on-chip; accumulate in f32 on the MXU.
    y = jnp.dot(x_ref[...], wf_ref[...], preferred_element_type=jnp.float32)
    o_ref[...] = (y + bf_ref[...]).astype(o_ref.dtype)


def fuse_params(w1, b1, w2, b2):
    """Fuse the two affine layers into one (call ONCE when weights are set).

    w1: (24, B); b1: (1, B); w2: (B, 128); b2: (1, 128)
    Returns f32 (wf: (24, 128), bf: (1, 128)) — kept in f32 on purpose.
    """
    w1f = w1.astype(jnp.float32)
    w2f = w2.astype(jnp.float32)
    wf = jnp.dot(w1f, w2f, preferred_element_type=jnp.float32)
    bf = jnp.dot(b1.astype(jnp.float32), w2f,
                 preferred_element_type=jnp.float32) + b2.astype(jnp.float32)
    return wf, bf


def _default_tile_n():
    try:
        kind = jax.devices()[0].device_kind.lower()
    except Exception:
        return 8192
    if "v5" in kind:
        return 4096
    return 8192


def _round_up(x, m):
    return ((x + m - 1) // m) * m


def feature_converter_forward_fused(feature_input, wf, bf, *, tile_n=None,
                                    out_dtype=None, input_buffers=None):
    """feature_input: (N, 24); wf: (24, 128) f32; bf: (1, 128) f32.

    Returns a flat (N * 128,) vector matching layer2(layer1(x)).flatten().
    out_dtype=jnp.bfloat16 halves store traffic if the consumer tolerates it.
    input_buffers (e.g. 3) optionally deepens the x-input pipeline (v7x sweep).
    """
    n, k = feature_input.shape
    assert k == _IN_FEATURES
    out_dtype = feature_input.dtype if out_dtype is None else out_dtype
    x_itemsize = jnp.dtype(feature_input.dtype).itemsize
    out_itemsize = jnp.dtype(out_dtype).itemsize

    if tile_n is None:
        tile_n = _default_tile_n()

    # Keep at least 2 grid steps for large N so v7x's 2 TensorCores split rows.
    if n >= 2048:
        tile_n = min(tile_n, _round_up(pl.cdiv(n, 2), _SUBLANE))

    if n <= tile_n:
        tile_n = n                                       # full-extent block: always legal
    else:
        tile_n = max(_SUBLANE, (tile_n // _SUBLANE) * _SUBLANE)
    grid = (pl.cdiv(n, tile_n),)

    # VMEM budget: x tile lane-pads to 128 lanes; out tile is 128 wide; both
    # double-buffered; tiny resident weights + headroom. Explicit limit so big
    # tiles are accepted on v5e (16 MiB default) and stay safe on v7x (64 MiB phys).
    per_step = tile_n * _LANE * x_itemsize + tile_n * _OUT_FEATURES * out_itemsize
    vmem_limit = 2 * per_step + (3 << 20)
    vmem_limit = int(min(max(vmem_limit, 16 << 20), 40 << 20))

    if input_buffers is not None and int(input_buffers) > 2:
        x_spec = pl.BlockSpec((tile_n, _IN_FEATURES), lambda i: (i, 0),
                              pipeline_mode=pl.Buffered(int(input_buffers)))
    else:
        x_spec = pl.BlockSpec((tile_n, _IN_FEATURES), lambda i: (i, 0))

    cost = pl.CostEstimate(
        flops=2 * n * _IN_FEATURES * _OUT_FEATURES,
        bytes_accessed=(n * _IN_FEATURES * x_itemsize
                        + n * _OUT_FEATURES * out_itemsize
                        + wf.size * 4 + bf.size * 4),
        transcendentals=0,
    )

    out = pl.pallas_call(
        _fused_affine_kernel,
        out_shape=jax.ShapeDtypeStruct((n, _OUT_FEATURES), out_dtype),
        grid=grid,
        in_specs=[
            x_spec,                                         # streamed row tiles
            pl.BlockSpec(wf.shape, lambda i: (0, 0)),       # VMEM-resident weights
            pl.BlockSpec(bf.shape, lambda i: (0, 0)),       # VMEM-resident bias
        ],
        out_specs=pl.BlockSpec((tile_n, _OUT_FEATURES), lambda i: (i, 0)),
        compiler_params=pltpu.CompilerParams(
            dimension_semantics=("parallel",),
            vmem_limit_bytes=vmem_limit,
        ),
        cost_estimate=cost,
    )(feature_input, wf, bf)
    return out.reshape(-1)


def feature_converter_forward(feature_input, w1, b1, w2, b2, **kwargs):
    """Convenience wrapper: fuses weights then runs the kernel.

    Prefer calling fuse_params once and feature_converter_forward_fused per step.
    """
    wf, bf = fuse_params(w1, b1, w2, b2)
    return feature_converter_forward_fused(feature_input, wf, bf, **kwargs)


def init_params(batch_size, key):
    """Deterministic synthetic parameters matching nn.Linear shapes.

    layer1: Linear(24, batch_size)  -> w1 (24, batch_size), b1 (1, batch_size)
    layer2: Linear(batch_size, 128) -> w2 (batch_size, 128), b2 (1, 128)
    """
    k1, k2, k3, k4 = jax.random.split(key, 4)
    bound1 = 1.0 / jnp.sqrt(24.0)
    bound2 = 1.0 / jnp.sqrt(float(batch_size))
    w1 = jax.random.uniform(k1, (24, batch_size), jnp.float32, -bound1, bound1)
    b1 = jax.random.uniform(k2, (1, batch_size), jnp.float32, -bound1, bound1)
    w2 = jax.random.uniform(k3, (batch_size, 128), jnp.float32, -bound2, bound2)
    b2 = jax.random.uniform(k4, (1, 128), jnp.float32, -bound2, bound2)
    return w1, b1, w2, b2


if __name__ == "__main__":
    key = jax.random.PRNGKey(0)
    k_in, k_params = jax.random.split(key)

    batch_size = 8          # constructor arg -> hidden width of layer1
    n_rows = 20             # leading dim of feature_input
    feature_input = jax.random.normal(k_in, (n_rows, 24), jnp.float32)

    w1, b1, w2, b2 = init_params(batch_size, k_params)

    # Pure-JAX reference (unfused two-Linear composition).
    ref = ((feature_input @ w1 + b1) @ w2 + b2).reshape(-1)

    # Hoisted one-time fusion (per perf review).
    wf, bf = fuse_params(w1, b1, w2, b2)

    # Path 1: default large-tile path (N fits in one block).
    out_single = feature_converter_forward_fused(feature_input, wf, bf)
    out_single = jax.block_until_ready(out_single)
    assert out_single.shape == (n_rows * 128,)
    assert jnp.allclose(out_single, ref, atol=1e-4, rtol=1e-4)

    # Path 2: multi-tile grid with a remainder block (exercise pipelined tiling).
    out_tiled = feature_converter_forward_fused(feature_input, wf, bf, tile_n=8)
    out_tiled = jax.block_until_ready(out_tiled)
    assert out_tiled.shape == (n_rows * 128,)
    assert jnp.allclose(out_tiled, ref, atol=1e-4, rtol=1e-4)

    # Path 3: bf16 output (halves the dominant store traffic; optional).
    out_bf16 = feature_converter_forward_fused(feature_input, wf, bf,
                                               out_dtype=jnp.bfloat16)
    out_bf16 = jax.block_until_ready(out_bf16)
    assert out_bf16.shape == (n_rows * 128,)
    assert jnp.allclose(out_bf16.astype(jnp.float32), ref, atol=3e-2, rtol=3e-2)

    # Path 4: convenience wrapper (fuses internally), sanity check.
    out_wrap = feature_converter_forward(feature_input, w1, b1, w2, b2)
    out_wrap = jax.block_until_ready(out_wrap)
    assert jnp.allclose(out_wrap, ref, atol=1e-4, rtol=1e-4)

    print("KERNEL_OK")
</pallas_src>

<mosaic_0001>
module attributes {stable_mosaic.version = 11 : i64} {
  func.func @_fused_affine_kernel(%arg0: i32, %arg1: memref<20x24xf32, #tpu.memory_space<vmem>>, %arg2: memref<24x128xf32, #tpu.memory_space<vmem>>, %arg3: memref<1x128xf32, #tpu.memory_space<vmem>>, %arg4: memref<20x128xf32, #tpu.memory_space<vmem>>) attributes {dimension_semantics = [#tpu.dimension_semantics<parallel>], iteration_bounds = array<i64: 1>, scalar_prefetch = 0 : i64, scratch_operands = 0 : i64, tpu.core_type = #tpu.core_type<tc>, window_params = [{transform_indices = @transform_0, window_bounds = array<i64: 20, 24>}, {pipeline_mode = #tpu.pipeline_mode<synchronous>, transform_indices = @transform_1, window_bounds = array<i64: 24, 128>}, {pipeline_mode = #tpu.pipeline_mode<synchronous>, transform_indices = @transform_2, window_bounds = array<i64: 1, 128>}, {transform_indices = @transform_3, window_bounds = array<i64: 20, 128>}]} {
    %c0 = arith.constant 0 : index
    %c0_0 = arith.constant 0 : index
    %0 = vector.load %arg1[%c0, %c0_0] : memref<20x24xf32, #tpu.memory_space<vmem>>, vector<20x24xf32>
    %c0_1 = arith.constant 0 : index
    %c0_2 = arith.constant 0 : index
    %1 = vector.load %arg2[%c0_1, %c0_2] : memref<24x128xf32, #tpu.memory_space<vmem>>, vector<24x128xf32>
    %cst = arith.constant dense<0.000000e+00> : vector<20x128xf32>
    %2 = tpu.matmul %0, %1, %cst {dimension_numbers = #tpu.dot_dimension_numbers<[1], [0], [0], [1], [0, 0, 1, 1], [], []>} : vector<20x24xf32>, vector<24x128xf32>, vector<20x128xf32> -> vector<20x128xf32>
    %c0_3 = arith.constant 0 : index
    %c0_4 = arith.constant 0 : index
    %3 = vector.load %arg3[%c0_3, %c0_4] : memref<1x128xf32, #tpu.memory_space<vmem>>, vector<1x128xf32>
    %4 = vector.broadcast %3 : vector<1x128xf32> to vector<20x128xf32>
    %5 = arith.addf %2, %4 : vector<20x128xf32>
    %c0_5 = arith.constant 0 : index
    %c0_6 = arith.constant 0 : index
    %6 = vector.load %arg4[%c0_5, %c0_6] : memref<20x128xf32, #tpu.memory_space<vmem>>, vector<20x128xf32>
    tpu.vector_store %arg4[%c0_5, %c0_6], %5 {strides = array<i32>} : memref<20x128xf32, #tpu.memory_space<vmem>>, vector<20x128xf32>,
    return
  }
  func.func @transform_0(%arg0: i32) -> (i32, i32) {
    %c0_i32 = arith.constant 0 : i32
    %c0_i32_0 = arith.constant 0 : i32
    return %arg0, %c0_i32 : i32, i32
  }
  func.func @transform_1(%arg0: i32) -> (i32, i32) {
    %c0_i32 = arith.constant 0 : i32
    %c0_i32_0 = arith.constant 0 : i32
    %c0_i32_1 = arith.constant 0 : i32
    return %c0_i32, %c0_i32_0 : i32, i32
  }
  func.func @transform_2(%arg0: i32) -> (i32, i32) {
    %c0_i32 = arith.constant 0 : i32
    %c0_i32_0 = arith.constant 0 : i32
    %c0_i32_1 = arith.constant 0 : i32
    return %c0_i32, %c0_i32_0 : i32, i32
  }
  func.func @transform_3(%arg0: i32) -> (i32, i32) {
    %c0_i32 = arith.constant 0 : i32
    %c0_i32_0 = arith.constant 0 : i32
    return %arg0, %c0_i32 : i32, i32
  }
}

</mosaic_0001>

<bundles_post_ra>
// kernel: tpu_custom_call.1
= control target key start
LH: loop header
LB: loop body
LE: loop exit
PB: predicated region body
PF: predicated region fallthrough
CT: control target
= control target key end

     0   :  { %8 = vsyncpa [#allocation3], 0  ;;  %s322_s0 = inlined_call_operand.hbm [shape: f32[20,24], index: 0, kind: input, shape index: {}]   ;;  %s323_s1 = inlined_call_operand.hbm [shape: f32[24,128], index: 1, kind: input, shape index: {}]   ;;  %s324_s2 = inlined_call_operand.vmem [shape: f32[1,128], index: 2, kind: input, shape index: {}]   ;;  %s325_s3 = inlined_call_operand.hbm [shape: f32[20,128], index: 3, kind: output, shape index: {}]  }
   0x1   :  { %9 = vsyncpa [#allocation6], 0 }
   0x2   :  { %10 = vsyncpa [#allocation4], 0  ;;  %s271_s12 = smov [#allocation2]  }
   0x3   :  { %s16_s13 = sshll.u32 %s271_s12, 4  ;;  %s17_s13 = int_to_ptr.vmem [resolvable:$true] %s16_s13 }
   0x4   :  { %s213_s14 = scalar_lea.vmem %s17_s13, 384  ;;  %p218_p1 = scmp.lt.s32.totalorder %s17_s13, %s17_s13 }
   0x5   :  { %p214_p0 = scmp.ne.s32.totalorder %s17_s13, %s213_s14  ;;  %p219_p2 = scmp.lt.s32.totalorder %s213_s14, %s213_s14 }
   0x7   :  { %p220_p3 = por %p219_p2, %p218_p1 }
   0x9   :  { %p221_p4 = pnand %p220_p3, %p214_p0 }
   0xb   :  { %224 = shalt.err (!%p221_p4)
}
   0xc   :  { %s272_s15 = smov 128   ;;  %s273_s16 = smov 8  }
   0xd   :  { %22 = dma.hbm_to_vmem [thread:$0]  %s322_s0, 384, %s17_s13, [#allocation3], %s272_s15, %s272_s15, %s273_s16  }
   0xe   :  { %s274_s19 = smov [#allocation5]  }
   0xf   :  { %s28_s20 = sshll.u32 %s274_s19, 4  ;;  %s29_s20 = int_to_ptr.vmem [resolvable:$true] %s28_s20 }
  0x10   :  { %s233_s21 = scalar_lea.vmem %s29_s20, 384  ;;  %p238_p6 = scmp.lt.s32.totalorder %s29_s20, %s29_s20 }
  0x11   :  { %p234_p5 = scmp.ne.s32.totalorder %s29_s20, %s233_s21  ;;  %p239_p7 = scmp.lt.s32.totalorder %s233_s21, %s233_s21 }
  0x13   :  { %p240_p8 = por %p239_p7, %p238_p6 }
  0x15   :  { %p241_p9 = pnand %p240_p8, %p234_p5 }
  0x17   :  { %244 = shalt.err (!%p241_p9)
}
  0x18   :  { %34 = dma.hbm_to_vmem [thread:$0]  %s323_s1, 384, %s29_s20, [#allocation6], %s272_s15, %s272_s15, %s273_s16  }
  0x19   :  { %265 = dma.done.wait [#allocation3], 384  }
  0x1a   :  { %266 = vsyncadd [#allocation3], 4294966912 }
  0x1b   :  { %267 = dma.done.wait [#allocation6], 384  }
  0x1c   :  { %268 = vsyncadd [#allocation6], 4294966912  ;;  %v275_v0 = vmov 0.0   ;;  %vm276_vm0 = vmmov 0   ;;  %v48_v1 = vld [vmem:[#allocation5 + $0x10] sm:$0xff]  ;;  %v47_v2 = vld [vmem:[#allocation5 + $0x8] sm:$0xff] }
  0x1d   :  { %192 = vmatprep.subr.mxu1 %v275_v0  ;;  %177 = vmatprep.subr.mxu0 %v275_v0  ;;  %v46_v3 = vld [vmem:[#allocation5] sm:$0xff]  ;;  %v44_v4 = vld [vmem:[#allocation2 + $0x8] sm:$0xff]  ;;  %vm56_vm1 = vcmask 195584   ;;  %v43_v5 = vld [vmem:[#allocation2] sm:$0xff]  ;;  %s277_s24 = smov [#allocation7]  }
  0x1e   :  { %186 = vmatprep.mubr.msk.f32.mxu1 %vm276_vm0, %v275_v0  ;;  %183 = vmatprep.mubr.msk.f32.mxu0 %vm276_vm0, %v275_v0  ;;  %v45_v6 = vld [vmem:[#allocation2 + $0x10] sm:$0xf]  ;;  %v167_v7 = vld [vmem:[%s324_s2] ss:$0 sm:$0xff]  ;;  %s154_s25 = sshll.u32 %s277_s24, 4  ;;  %s155_s25 = int_to_ptr.vmem [resolvable:$true] %s154_s25 }
  0x1f   :  { %195 = vmatpush3.msra.mxu1 %v48_v1  ;;  %178 = vmatpush3.msra.mxu0 %v48_v1  ;;  %s245_s26 = scalar_lea.vmem %s155_s25, 384  ;;  %p250_p11 = scmp.lt.s32.totalorder %s155_s25, %s155_s25 }
  0x20   :  { %193 = vmatprep.subr.mxu1 %v275_v0  ;;  %179 = vmatprep.subr.mxu0 %v275_v0  ;;  %p246_p10 = scmp.ne.s32.totalorder %s155_s25, %s245_s26  ;;  %p251_p12 = scmp.lt.s32.totalorder %s245_s26, %s245_s26 }
  0x21   :  { %196 = vmatpush3.msra.mxu1 %v47_v2  ;;  %180 = vmatpush3.msra.mxu0 %v47_v2 }
  0x22   :  { %194 = vmatprep.subr.mxu1 %v275_v0  ;;  %181 = vmatprep.subr.mxu0 %v275_v0  ;;  %p252_p13 = por %p251_p12, %p250_p11 }
  0x23   :  { %197 = vmatpush3.msra.mxu1 %v46_v3  ;;  %182 = vmatpush3.msra.mxu0 %v46_v3 }
  0x24   :  { %187 = vmatmul.mubr.msk.f32.vlgmr.msra.gmra.mxu1 %vm56_vm1, %v44_v4  ;;  %184 = vmatmul.mubr.msk.f32.vlgmr.msra.gmra.mxu0 %vm56_vm1, %v43_v5  ;;  %p253_p0 = pnand %p252_p13, %p246_p10 }
  0x25   :  { %189 = vmatprep.mubr.msk.f32.mxu1 %vm276_vm0, %v275_v0 }
  0x28   :  { %190 = vmatmul.mubr.msk.f32.gmra.mxu1 %vm56_vm1, %v45_v6 }
  0xe4   :  { %v137_v8 = vpop.f32.mrf.mxu1  ;;  %v132_v9 = vpop.f32.mrf.mxu0 }
  0xe5   :  { %v138_v10 = vadd.f32 %v167_v7, %v137_v8  ;;  %v133_v11 = vadd.f32 %v167_v7, %v132_v9 }
  0xe6   :  { %v188_v12 = vpop.f32.mrf.mxu1  ;;  %v185_v13 = vpop.f32.mrf.mxu0 }
  0xe7   :  { %147 = vst [vmem:[#allocation7 + $0x8] sm:$0xff] %v138_v10  ;;  %146 = vst [vmem:[#allocation7] sm:$0xff] %v133_v11 }
  0xe8   :  { %v142_v14 = vpop.f32.mrf.mxu1 }
  0xe9   :  { %v143_v15 = vadd.f32 %v167_v7, %v142_v14 }
  0xea   :  { %v191_v16 = vpop.f32.mrf.mxu1 }
  0xeb   :  { %148 = vst [vmem:[#allocation7 + $0x10] sm:$0xf] %v143_v15 }
  0xec   :  { %256 = shalt.err (!%p253_p0)
}
  0xed   :  { %160 = dma.vmem_to_hbm [thread:$0]  %s155_s25, 384, %s325_s3, [#allocation4], %s272_s15, %s272_s15, %s273_s16  }
  0xee   :  { %269 = dma.done.wait [#allocation4], 384  }
  0xef   :  { %270 = vsyncadd [#allocation4], 4294966912 }
  0xf0   :  { %164 = vsyncpa [#allocation3], 1 }
  0xf1   :  { %165 = vsyncpa [#allocation6], 1 }
  0xf2   :  { %166 = vsyncpa [#allocation4], 1 }

</bundles_post_ra>
